<compile_context>
chip_gen: v5e
topology: v5e:2x2
jax: 0.10.0
libtpu: 0.0.40
codegen_flags: <defaults>
</compile_context>

<pallas_src>
import functools
import itertools

import numpy as np

import jax
import jax.numpy as jnp
from jax.experimental import pallas as pl
from jax.experimental.pallas import tpu as pltpu

# ----------------------------- problem sizes --------------------------------
B, Q, C, TMAX = 2, 8, 16, 4   # batch, queries, classes, max targets per image

# Matcher cost weights (DINO defaults)
COST_CLASS, COST_BBOX, COST_GIOU = 2.0, 5.0, 2.0
MATCHER_ALPHA = 0.25
EPS = 1e-7                     # guards union / enclosing-area divisions


def _vmem_spec():
    return pl.BlockSpec(memory_space=pltpu.MemorySpace.VMEM)


def _softplus(x):
    # softplus(x) = -log(1 - sigmoid(x)) ; softplus(-x) = -log(sigmoid(x))
    return jnp.maximum(x, 0.0) + jnp.log1p(jnp.exp(-jnp.abs(x)))


# ============================ Pallas kernels =================================
def _cost_kernel(logits_ref, pboxes_ref, labels_ref, tboxes_t_ref, cost_ref):
    """Whole-batch matcher cost matrix (no grid; everything lives in VMEM).

    logits_ref   : (B, Q, C)     prediction logits
    pboxes_ref   : (B, Q, 4)     prediction boxes (cxcywh)
    labels_ref   : (B, 1, TMAX)  int32 target labels, padded with num_classes
    tboxes_t_ref : (B, 4, TMAX)  target boxes (cxcywh, transposed)
    cost_ref     : (B, Q, TMAX)  output cost matrix (padded columns get +1e6)
    """
    alpha = MATCHER_ALPHA
    x = logits_ref[...]
    prob = jax.nn.sigmoid(x)
    sp_pos = _softplus(x)            # -log(1 - prob)
    sp_neg = sp_pos - x              # -log(prob) == softplus(-x)
    neg_cost = (1.0 - alpha) * prob * prob * sp_pos
    pos_cost = alpha * (1.0 - prob) * (1.0 - prob) * sp_neg
    delta = pos_cost - neg_cost                                    # (B, Q, C)

    # Class cost: VPU gather -- compare labels against a class iota, multiply,
    # reduce over the C lane axis (one column per target slot, TMAX unrolled).
    labels = labels_ref[...]                                       # (B, 1, TMAX)
    class_iota = jax.lax.broadcasted_iota(jnp.int32, (B, 1, C), 2)
    cols = []
    for t in range(TMAX):
        lbl = labels[:, :, t:t + 1]                                # (B, 1, 1)
        sel = (lbl == class_iota).astype(jnp.float32)              # (B, 1, C)
        cols.append(jnp.sum(delta * sel, axis=-1, keepdims=True))  # (B, Q, 1)
    cost_class = jnp.concatenate(cols, axis=-1)                    # (B, Q, TMAX)

    pb = pboxes_ref[...]                                           # (B, Q, 4)
    tb = tboxes_t_ref[...]                                         # (B, 4, TMAX)
    pcx, pcy = pb[:, :, 0:1], pb[:, :, 1:2]                        # (B, Q, 1)
    pw, ph = pb[:, :, 2:3], pb[:, :, 3:4]
    tcx, tcy = tb[:, 0:1, :], tb[:, 1:2, :]                        # (B, 1, TMAX)
    tw, th = tb[:, 2:3, :], tb[:, 3:4, :]

    cost_bbox = (jnp.abs(pcx - tcx) + jnp.abs(pcy - tcy)
                 + jnp.abs(pw - tw) + jnp.abs(ph - th))            # (B, Q, TMAX)

    # cxcywh -> xyxy and GIoU cost
    px1, px2 = pcx - 0.5 * pw, pcx + 0.5 * pw
    py1, py2 = pcy - 0.5 * ph, pcy + 0.5 * ph
    tx1, tx2 = tcx - 0.5 * tw, tcx + 0.5 * tw
    ty1, ty2 = tcy - 0.5 * th, tcy + 0.5 * th

    area_p = (px2 - px1) * (py2 - py1)                             # (B, Q, 1)
    area_t = (tx2 - tx1) * (ty2 - ty1)                             # (B, 1, TMAX)
    iw = jnp.maximum(jnp.minimum(px2, tx2) - jnp.maximum(px1, tx1), 0.0)
    ih = jnp.maximum(jnp.minimum(py2, ty2) - jnp.maximum(py1, ty1), 0.0)
    inter = iw * ih
    union = area_p + area_t - inter
    iou = inter / (union + EPS)
    ew = jnp.maximum(px2, tx2) - jnp.minimum(px1, tx1)
    eh = jnp.maximum(py2, ty2) - jnp.minimum(py1, ty1)
    enc = ew * eh
    giou = iou - (enc - union) / (enc + EPS)

    valid = (labels < C).astype(jnp.float32)                       # (B, 1, TMAX)
    cost = (COST_BBOX * cost_bbox + COST_CLASS * cost_class
            + COST_GIOU * (-giou))
    cost_ref[...] = cost + (1.0 - valid) * 1e6


def compute_cost_matrix(pred_logits, pred_boxes, labels_pad, tboxes_t):
    return pl.pallas_call(
        _cost_kernel,
        out_shape=jax.ShapeDtypeStruct((B, Q, TMAX), jnp.float32),
        in_specs=[_vmem_spec(), _vmem_spec(), _vmem_spec(), _vmem_spec()],
        out_specs=_vmem_spec(),
    )(pred_logits, pred_boxes, labels_pad, tboxes_t)


def _make_fused_loss_kernel(alpha):
    def kernel(logits_ref, onehot_ref, pboxes_ref, tboxes_ref, mask_ref, out_ref):
        # ---- sigmoid focal loss sum over all (B, Q, C) elements, gamma = 2 ----
        x = logits_ref[...]
        t = onehot_ref[...]
        p = jax.nn.sigmoid(x)
        # numerically stable binary_cross_entropy_with_logits
        ce = jnp.maximum(x, 0.0) - x * t + jnp.log1p(jnp.exp(-jnp.abs(x)))
        p_t = p * t + (1.0 - p) * (1.0 - t)
        alpha_t = alpha * t + (1.0 - alpha) * (1.0 - t)
        focal_sum = jnp.sum(alpha_t * ce * (1.0 - p_t) * (1.0 - p_t))

        # ---- matched-box L1 (xy / hw split) and GIoU losses (masked) ---------
        s = pboxes_ref[...]                                        # (B, Q, 4)
        g = tboxes_ref[...]                                        # (B, Q, 4)
        m = mask_ref[...]                                          # (B, Q, 1)

        d = jnp.abs(s - g) * m
        xy_sum = jnp.sum(d[:, :, 0:2])
        hw_sum = jnp.sum(d[:, :, 2:4])

        scx, scy = s[:, :, 0:1], s[:, :, 1:2]
        sw, sh = s[:, :, 2:3], s[:, :, 3:4]
        gcx, gcy = g[:, :, 0:1], g[:, :, 1:2]
        gw, gh = g[:, :, 2:3], g[:, :, 3:4]

        sx1, sx2 = scx - 0.5 * sw, scx + 0.5 * sw
        sy1, sy2 = scy - 0.5 * sh, scy + 0.5 * sh
        gx1, gx2 = gcx - 0.5 * gw, gcx + 0.5 * gw
        gy1, gy2 = gcy - 0.5 * gh, gcy + 0.5 * gh

        area_s = (sx2 - sx1) * (sy2 - sy1)
        area_g = (gx2 - gx1) * (gy2 - gy1)
        iw = jnp.maximum(jnp.minimum(sx2, gx2) - jnp.maximum(sx1, gx1), 0.0)
        ih = jnp.maximum(jnp.minimum(sy2, gy2) - jnp.maximum(sy1, gy1), 0.0)
        inter = iw * ih
        union = area_s + area_g - inter
        iou = inter / (union + EPS)
        ew = jnp.maximum(sx2, gx2) - jnp.minimum(sx1, gx1)
        eh = jnp.maximum(sy2, gy2) - jnp.minimum(sy1, gy1)
        enc = ew * eh
        giou = iou - (enc - union) / (enc + EPS)
        giou_sum = jnp.sum((1.0 - giou) * m)

        # ---- single lane-packed output row -----------------------------------
        lane = jax.lax.broadcasted_iota(jnp.int32, (1, 8), 1)
        out_ref[...] = (jnp.where(lane == 0, focal_sum, 0.0)
                        + jnp.where(lane == 1, xy_sum, 0.0)
                        + jnp.where(lane == 2, hw_sum, 0.0)
                        + jnp.where(lane == 3, xy_sum + hw_sum, 0.0)
                        + jnp.where(lane == 4, giou_sum, 0.0))
    return kernel


def fused_losses(pred_logits, onehot, pred_boxes, tgt_boxes, match_mask, alpha):
    return pl.pallas_call(
        _make_fused_loss_kernel(alpha),
        out_shape=jax.ShapeDtypeStruct((1, 8), jnp.float32),
        in_specs=[_vmem_spec()] * 5,
        out_specs=_vmem_spec(),
    )(pred_logits, onehot, pred_boxes, tgt_boxes, match_mask)


# ============================ Criterion wrapper ==============================
class SetCriterionPallas:
    """JAX/Pallas re-implementation of DINO SetCriterion forward (eval path)."""

    def __init__(self, num_classes, focal_alpha, losses):
        assert num_classes == C, "demo kernels are specialized to C classes"
        self.num_classes = num_classes
        self.focal_alpha = focal_alpha
        self.losses = losses

    # -------------------- Hungarian matcher (cost in Pallas) ----------------
    def matcher(self, outputs, targets):
        # Minimal host packing of ragged targets into fixed padded arrays.
        labels_pad = np.full((B, 1, TMAX), self.num_classes, np.int32)
        tboxes_t = np.tile(np.array([0.5, 0.5, 0.1, 0.1], np.float32)[None, :, None],
                           (B, 1, TMAX))
        for b, t in enumerate(targets):
            nb = len(t['labels'])
            if nb:
                labels_pad[b, 0, :nb] = np.asarray(t['labels'], np.int32)
                tboxes_t[b, :, :nb] = np.asarray(t['boxes'], np.float32).T

        cost = np.asarray(compute_cost_matrix(
            outputs['pred_logits'], outputs['pred_boxes'],
            jnp.asarray(labels_pad), jnp.asarray(tboxes_t)))

        # TODO(synk): Hungarian linear_sum_assignment has no Pallas equivalent;
        # exact brute force over permutations on the host (fine at Q=8, not at Q~900).
        indices = []
        for b, t in enumerate(targets):
            nb = len(t['labels'])
            if nb == 0:
                indices.append((np.zeros((0,), np.int64), np.zeros((0,), np.int64)))
                continue
            best_perm, best_cost = None, None
            for perm in itertools.permutations(range(Q), nb):
                c = sum(cost[b, perm[j], j] for j in range(nb))
                if best_cost is None or c < best_cost:
                    best_cost, best_perm = c, perm
            src = np.array(best_perm, np.int64)
            tgt = np.arange(nb, dtype=np.int64)
            order = np.argsort(src)
            indices.append((src[order], tgt[order]))
        return indices

    # ------------------------------ forward ----------------------------------
    def forward(self, outputs, targets):
        outputs_without_aux = {k: v for k, v in outputs.items() if k != 'aux_outputs'}
        indices = self.matcher(outputs_without_aux, targets)

        num_boxes = float(max(sum(len(t['labels']) for t in targets), 1))

        losses = {}
        # dn_meta is None -> eval-style zero de-noising losses branch.
        # TODO(synk): training de-noising (dn_meta) / aux_outputs branches not exercised.
        for k in ('loss_bbox_dn', 'loss_giou_dn', 'loss_ce_dn',
                  'loss_xy_dn', 'loss_hw_dn'):
            losses[k] = jnp.asarray(0.0, jnp.float32)

        # ---- host-side index bookkeeping (depends on the Hungarian result) ----
        target_classes = np.full((B, Q), self.num_classes, np.int32)
        tgt_scatter = np.tile(np.array([0.5, 0.5, 0.1, 0.1], np.float32), (B, Q, 1))
        match_mask = np.zeros((B, Q, 1), np.float32)
        batch_idx, src_idx, tgt_lbl = [], [], []
        for b, ((src, tgt), t) in enumerate(zip(indices, targets)):
            lbl = np.asarray(t['labels'], np.int64)
            box = np.asarray(t['boxes'], np.float32)
            for s_i, t_i in zip(src, tgt):
                target_classes[b, s_i] = lbl[t_i]
                tgt_scatter[b, s_i] = box[t_i]
                match_mask[b, s_i, 0] = 1.0
            batch_idx.append(np.full_like(src, b))
            src_idx.append(src)
            tgt_lbl.append(lbl[tgt])
        n_matched = int(match_mask.sum())

        # Device-side one-hot (B, Q, C) built with jnp (no host BQC float array).
        tc_dev = jnp.asarray(target_classes)
        onehot = (tc_dev[:, :, None]
                  == jnp.arange(self.num_classes, dtype=jnp.int32)[None, None, :]
                  ).astype(jnp.float32)

        # Single fused Pallas launch for focal sum + box losses.
        out = fused_losses(outputs['pred_logits'], onehot, outputs['pred_boxes'],
                           jnp.asarray(tgt_scatter), jnp.asarray(match_mask),
                           self.focal_alpha)

        if 'labels' in self.losses:
            num_queries = outputs['pred_logits'].shape[1]
            # sigmoid_focal_loss(...).mean(1).sum() / num_boxes * num_queries
            losses['loss_ce'] = (out[0, 0] / num_queries) / num_boxes * num_queries
            if n_matched > 0:
                bi = jnp.asarray(np.concatenate(batch_idx))
                si = jnp.asarray(np.concatenate(src_idx))
                matched_logits = outputs['pred_logits'][bi, si]
                pred_cls = jnp.argmax(matched_logits, axis=-1)
                tgt_cls = jnp.asarray(np.concatenate(tgt_lbl))
                acc = jnp.mean((pred_cls == tgt_cls).astype(jnp.float32)) * 100.0
                losses['class_error'] = 100.0 - acc
            else:
                losses['class_error'] = jnp.asarray(100.0, jnp.float32)

        if 'boxes' in self.losses:
            losses['loss_bbox'] = out[0, 3] / num_boxes
            losses['loss_giou'] = out[0, 4] / num_boxes
            losses['loss_xy'] = out[0, 1] / num_boxes
            losses['loss_hw'] = out[0, 2] / num_boxes
        return losses


# ================================= main ======================================
if __name__ == "__main__":
    key = jax.random.PRNGKey(0)
    k1, k2, k3, k4 = jax.random.split(key, 4)

    pred_logits = jax.random.normal(k1, (B, Q, C), jnp.float32)
    raw = jax.random.uniform(k2, (B, Q, 4), jnp.float32)
    pred_boxes = jnp.concatenate(
        [0.25 + 0.5 * raw[..., :2], 0.05 + 0.3 * raw[..., 2:]], axis=-1)

    rb0 = np.asarray(jax.random.uniform(k3, (3, 4), jnp.float32))
    rb1 = np.asarray(jax.random.uniform(k4, (2, 4), jnp.float32))
    tb0 = np.concatenate([0.25 + 0.5 * rb0[:, :2], 0.05 + 0.3 * rb0[:, 2:]], axis=1)
    tb1 = np.concatenate([0.25 + 0.5 * rb1[:, :2], 0.05 + 0.3 * rb1[:, 2:]], axis=1)

    targets = [
        {'labels': np.array([1, 5, 9], np.int64), 'boxes': tb0.astype(np.float32)},
        {'labels': np.array([2, 7], np.int64), 'boxes': tb1.astype(np.float32)},
    ]
    outputs = {'pred_logits': pred_logits, 'pred_boxes': pred_boxes, 'dn_meta': None}

    criterion = SetCriterionPallas(num_classes=C, focal_alpha=0.25,
                                   losses=['labels', 'boxes'])
    losses = criterion.forward(outputs, targets)
    for v in jax.tree_util.tree_leaves(losses):
        jax.block_until_ready(v)
    print("KERNEL_OK")
</pallas_src>

<mosaic_0001>
module attributes {stable_mosaic.version = 11 : i64} {
  func.func @_cost_kernel(%arg0: memref<2x8x16xf32, #tpu.memory_space<vmem>>, %arg1: memref<2x8x4xf32, #tpu.memory_space<vmem>>, %arg2: memref<2x1x4xi32, #tpu.memory_space<vmem>>, %arg3: memref<2x4x4xf32, #tpu.memory_space<vmem>>, %arg4: memref<2x8x4xf32, #tpu.memory_space<vmem>>) attributes {dimension_semantics = [], scalar_prefetch = 0 : i64, scratch_operands = 0 : i64, tpu.core_type = #tpu.core_type<tc>} {
    %c0 = arith.constant 0 : index
    %c0_0 = arith.constant 0 : index
    %c0_1 = arith.constant 0 : index
    %0 = vector.load %arg0[%c0, %c0_0, %c0_1] : memref<2x8x16xf32, #tpu.memory_space<vmem>>, vector<2x8x16xf32>
    %1 = arith.negf %0 : vector<2x8x16xf32>
    %2 = math.exp %1 : vector<2x8x16xf32>
    %cst = arith.constant 1.000000e+00 : f32
    %3 = vector.broadcast %cst : f32 to vector<2x8x16xf32>
    %4 = arith.addf %3, %2 : vector<2x8x16xf32>
    %5 = arith.divf %3, %4 : vector<2x8x16xf32>
    %cst_2 = arith.constant 0.000000e+00 : f32
    %6 = vector.broadcast %cst_2 : f32 to vector<2x8x16xf32>
    %7 = arith.maximumf %0, %6 : vector<2x8x16xf32>
    %8 = math.absf %0 : vector<2x8x16xf32>
    %cst_3 = arith.constant 0.000000e+00 : f32
    %9 = vector.broadcast %cst_3 : f32 to vector<2x8x16xf32>
    %10 = arith.subf %9, %8 : vector<2x8x16xf32>
    %11 = math.exp %10 : vector<2x8x16xf32>
    %12 = math.log1p %11 : vector<2x8x16xf32>
    %13 = arith.addf %7, %12 : vector<2x8x16xf32>
    %14 = arith.subf %13, %0 : vector<2x8x16xf32>
    %cst_4 = arith.constant 7.500000e-01 : f32
    %15 = vector.broadcast %cst_4 : f32 to vector<2x8x16xf32>
    %16 = arith.mulf %15, %5 : vector<2x8x16xf32>
    %17 = arith.mulf %16, %5 : vector<2x8x16xf32>
    %18 = arith.mulf %17, %13 : vector<2x8x16xf32>
    %cst_5 = arith.constant 1.000000e+00 : f32
    %19 = vector.broadcast %cst_5 : f32 to vector<2x8x16xf32>
    %20 = arith.subf %19, %5 : vector<2x8x16xf32>
    %cst_6 = arith.constant 2.500000e-01 : f32
    %21 = vector.broadcast %cst_6 : f32 to vector<2x8x16xf32>
    %22 = arith.mulf %21, %20 : vector<2x8x16xf32>
    %cst_7 = arith.constant 1.000000e+00 : f32
    %23 = vector.broadcast %cst_7 : f32 to vector<2x8x16xf32>
    %24 = arith.subf %23, %5 : vector<2x8x16xf32>
    %25 = arith.mulf %22, %24 : vector<2x8x16xf32>
    %26 = arith.mulf %25, %14 : vector<2x8x16xf32>
    %27 = arith.subf %26, %18 : vector<2x8x16xf32>
    %c0_8 = arith.constant 0 : index
    %c0_9 = arith.constant 0 : index
    %c0_10 = arith.constant 0 : index
    %28 = vector.load %arg2[%c0_8, %c0_9, %c0_10] : memref<2x1x4xi32, #tpu.memory_space<vmem>>, vector<2x1x4xi32>
    %29 = tpu.iota {dimensions = array<i32: 2>} : vector<2x1x16xi32>
    %30 = vector.extract_strided_slice %28 {offsets = [0, 0, 0], sizes = [2, 1, 1], strides = [1, 1, 1]} : vector<2x1x4xi32> to vector<2x1x1xi32>
    %31 = vector.broadcast %30 : vector<2x1x1xi32> to vector<2x1x16xi32>
    %32 = arith.cmpi eq, %31, %29 : vector<2x1x16xi32>
    %33 = arith.extui %32 : vector<2x1x16xi1> to vector<2x1x16xi32>
    %34 = arith.sitofp %33 : vector<2x1x16xi32> to vector<2x1x16xf32>
    %35 = vector.broadcast %34 : vector<2x1x16xf32> to vector<2x8x16xf32>
    %36 = arith.mulf %27, %35 : vector<2x8x16xf32>
    %cst_11 = arith.constant dense<0.000000e+00> : vector<2x8xf32>
    %37 = vector.multi_reduction <add>, %36, %cst_11 [2] : vector<2x8x16xf32> to vector<2x8xf32>
    %38 = vector.shape_cast %37 : vector<2x8xf32> to vector<2x8x1xf32>
    %39 = vector.extract_strided_slice %28 {offsets = [0, 0, 1], sizes = [2, 1, 1], strides = [1, 1, 1]} : vector<2x1x4xi32> to vector<2x1x1xi32>
    %40 = vector.broadcast %39 : vector<2x1x1xi32> to vector<2x1x16xi32>
    %41 = arith.cmpi eq, %40, %29 : vector<2x1x16xi32>
    %42 = arith.extui %41 : vector<2x1x16xi1> to vector<2x1x16xi32>
    %43 = arith.sitofp %42 : vector<2x1x16xi32> to vector<2x1x16xf32>
    %44 = vector.broadcast %43 : vector<2x1x16xf32> to vector<2x8x16xf32>
    %45 = arith.mulf %27, %44 : vector<2x8x16xf32>
    %cst_12 = arith.constant dense<0.000000e+00> : vector<2x8xf32>
    %46 = vector.multi_reduction <add>, %45, %cst_12 [2] : vector<2x8x16xf32> to vector<2x8xf32>
    %47 = vector.shape_cast %46 : vector<2x8xf32> to vector<2x8x1xf32>
    %48 = vector.extract_strided_slice %28 {offsets = [0, 0, 2], sizes = [2, 1, 1], strides = [1, 1, 1]} : vector<2x1x4xi32> to vector<2x1x1xi32>
    %49 = vector.broadcast %48 : vector<2x1x1xi32> to vector<2x1x16xi32>
    %50 = arith.cmpi eq, %49, %29 : vector<2x1x16xi32>
    %51 = arith.extui %50 : vector<2x1x16xi1> to vector<2x1x16xi32>
    %52 = arith.sitofp %51 : vector<2x1x16xi32> to vector<2x1x16xf32>
    %53 = vector.broadcast %52 : vector<2x1x16xf32> to vector<2x8x16xf32>
    %54 = arith.mulf %27, %53 : vector<2x8x16xf32>
    %cst_13 = arith.constant dense<0.000000e+00> : vector<2x8xf32>
    %55 = vector.multi_reduction <add>, %54, %cst_13 [2] : vector<2x8x16xf32> to vector<2x8xf32>
    %56 = vector.shape_cast %55 : vector<2x8xf32> to vector<2x8x1xf32>
    %57 = vector.extract_strided_slice %28 {offsets = [0, 0, 3], sizes = [2, 1, 1], strides = [1, 1, 1]} : vector<2x1x4xi32> to vector<2x1x1xi32>
    %58 = vector.broadcast %57 : vector<2x1x1xi32> to vector<2x1x16xi32>
    %59 = arith.cmpi eq, %58, %29 : vector<2x1x16xi32>
    %60 = arith.extui %59 : vector<2x1x16xi1> to vector<2x1x16xi32>
    %61 = arith.sitofp %60 : vector<2x1x16xi32> to vector<2x1x16xf32>
    %62 = vector.broadcast %61 : vector<2x1x16xf32> to vector<2x8x16xf32>
    %63 = arith.mulf %27, %62 : vector<2x8x16xf32>
    %cst_14 = arith.constant dense<0.000000e+00> : vector<2x8xf32>
    %64 = vector.multi_reduction <add>, %63, %cst_14 [2] : vector<2x8x16xf32> to vector<2x8xf32>
    %65 = vector.shape_cast %64 : vector<2x8xf32> to vector<2x8x1xf32>
    %66 = tpu.concatenate %38, %47, %56, %65 in 2 : vector<2x8x1xf32>, vector<2x8x1xf32>, vector<2x8x1xf32>, vector<2x8x1xf32> -> vector<2x8x4xf32>
    %c0_15 = arith.constant 0 : index
    %c0_16 = arith.constant 0 : index
    %c0_17 = arith.constant 0 : index
    %67 = vector.load %arg1[%c0_15, %c0_16, %c0_17] : memref<2x8x4xf32, #tpu.memory_space<vmem>>, vector<2x8x4xf32>
    %c0_18 = arith.constant 0 : index
    %c0_19 = arith.constant 0 : index
    %c0_20 = arith.constant 0 : index
    %68 = vector.load %arg3[%c0_18, %c0_19, %c0_20] : memref<2x4x4xf32, #tpu.memory_space<vmem>>, vector<2x4x4xf32>
    %69 = vector.extract_strided_slice %67 {offsets = [0, 0, 0], sizes = [2, 8, 1], strides = [1, 1, 1]} : vector<2x8x4xf32> to vector<2x8x1xf32>
    %70 = vector.extract_strided_slice %67 {offsets = [0, 0, 1], sizes = [2, 8, 1], strides = [1, 1, 1]} : vector<2x8x4xf32> to vector<2x8x1xf32>
    %71 = vector.extract_strided_slice %67 {offsets = [0, 0, 2], sizes = [2, 8, 1], strides = [1, 1, 1]} : vector<2x8x4xf32> to vector<2x8x1xf32>
    %72 = vector.extract_strided_slice %67 {offsets = [0, 0, 3], sizes = [2, 8, 1], strides = [1, 1, 1]} : vector<2x8x4xf32> to vector<2x8x1xf32>
    %73 = vector.extract_strided_slice %68 {offsets = [0, 0, 0], sizes = [2, 1, 4], strides = [1, 1, 1]} : vector<2x4x4xf32> to vector<2x1x4xf32>
    %74 = vector.extract_strided_slice %68 {offsets = [0, 1, 0], sizes = [2, 1, 4], strides = [1, 1, 1]} : vector<2x4x4xf32> to vector<2x1x4xf32>
    %75 = vector.extract_strided_slice %68 {offsets = [0, 2, 0], sizes = [2, 1, 4], strides = [1, 1, 1]} : vector<2x4x4xf32> to vector<2x1x4xf32>
    %76 = vector.extract_strided_slice %68 {offsets = [0, 3, 0], sizes = [2, 1, 4], strides = [1, 1, 1]} : vector<2x4x4xf32> to vector<2x1x4xf32>
    %77 = vector.broadcast %69 : vector<2x8x1xf32> to vector<2x8x4xf32>
    %78 = vector.broadcast %73 : vector<2x1x4xf32> to vector<2x8x4xf32>
    %79 = arith.subf %77, %78 : vector<2x8x4xf32>
    %80 = math.absf %79 : vector<2x8x4xf32>
    %81 = vector.broadcast %70 : vector<2x8x1xf32> to vector<2x8x4xf32>
    %82 = vector.broadcast %74 : vector<2x1x4xf32> to vector<2x8x4xf32>
    %83 = arith.subf %81, %82 : vector<2x8x4xf32>
    %84 = math.absf %83 : vector<2x8x4xf32>
    %85 = arith.addf %80, %84 : vector<2x8x4xf32>
    %86 = vector.broadcast %71 : vector<2x8x1xf32> to vector<2x8x4xf32>
    %87 = vector.broadcast %75 : vector<2x1x4xf32> to vector<2x8x4xf32>
    %88 = arith.subf %86, %87 : vector<2x8x4xf32>
    %89 = math.absf %88 : vector<2x8x4xf32>
    %90 = arith.addf %85, %89 : vector<2x8x4xf32>
    %91 = vector.broadcast %72 : vector<2x8x1xf32> to vector<2x8x4xf32>
    %92 = vector.broadcast %76 : vector<2x1x4xf32> to vector<2x8x4xf32>
    %93 = arith.subf %91, %92 : vector<2x8x4xf32>
    %94 = math.absf %93 : vector<2x8x4xf32>
    %95 = arith.addf %90, %94 : vector<2x8x4xf32>
    %cst_21 = arith.constant 5.000000e-01 : f32
    %96 = vector.broadcast %cst_21 : f32 to vector<2x8x1xf32>
    %97 = arith.mulf %96, %71 : vector<2x8x1xf32>
    %98 = arith.subf %69, %97 : vector<2x8x1xf32>
    %cst_22 = arith.constant 5.000000e-01 : f32
    %99 = vector.broadcast %cst_22 : f32 to vector<2x8x1xf32>
    %100 = arith.mulf %99, %71 : vector<2x8x1xf32>
    %101 = arith.addf %69, %100 : vector<2x8x1xf32>
    %cst_23 = arith.constant 5.000000e-01 : f32
    %102 = vector.broadcast %cst_23 : f32 to vector<2x8x1xf32>
    %103 = arith.mulf %102, %72 : vector<2x8x1xf32>
    %104 = arith.subf %70, %103 : vector<2x8x1xf32>
    %cst_24 = arith.constant 5.000000e-01 : f32
    %105 = vector.broadcast %cst_24 : f32 to vector<2x8x1xf32>
    %106 = arith.mulf %105, %72 : vector<2x8x1xf32>
    %107 = arith.addf %70, %106 : vector<2x8x1xf32>
    %cst_25 = arith.constant 5.000000e-01 : f32
    %108 = vector.broadcast %cst_25 : f32 to vector<2x1x4xf32>
    %109 = arith.mulf %108, %75 : vector<2x1x4xf32>
    %110 = arith.subf %73, %109 : vector<2x1x4xf32>
    %cst_26 = arith.constant 5.000000e-01 : f32
    %111 = vector.broadcast %cst_26 : f32 to vector<2x1x4xf32>
    %112 = arith.mulf %111, %75 : vector<2x1x4xf32>
    %113 = arith.addf %73, %112 : vector<2x1x4xf32>
    %cst_27 = arith.constant 5.000000e-01 : f32
    %114 = vector.broadcast %cst_27 : f32 to vector<2x1x4xf32>
    %115 = arith.mulf %114, %76 : vector<2x1x4xf32>
    %116 = arith.subf %74, %115 : vector<2x1x4xf32>
    %cst_28 = arith.constant 5.000000e-01 : f32
    %117 = vector.broadcast %cst_28 : f32 to vector<2x1x4xf32>
    %118 = arith.mulf %117, %76 : vector<2x1x4xf32>
    %119 = arith.addf %74, %118 : vector<2x1x4xf32>
    %120 = arith.subf %101, %98 : vector<2x8x1xf32>
    %121 = arith.subf %107, %104 : vector<2x8x1xf32>
    %122 = arith.mulf %120, %121 : vector<2x8x1xf32>
    %123 = arith.subf %113, %110 : vector<2x1x4xf32>
    %124 = arith.subf %119, %116 : vector<2x1x4xf32>
    %125 = arith.mulf %123, %124 : vector<2x1x4xf32>
    %126 = vector.broadcast %101 : vector<2x8x1xf32> to vector<2x8x4xf32>
    %127 = vector.broadcast %113 : vector<2x1x4xf32> to vector<2x8x4xf32>
    %128 = arith.minimumf %126, %127 : vector<2x8x4xf32>
    %129 = vector.broadcast %98 : vector<2x8x1xf32> to vector<2x8x4xf32>
    %130 = vector.broadcast %110 : vector<2x1x4xf32> to vector<2x8x4xf32>
    %131 = arith.maximumf %129, %130 : vector<2x8x4xf32>
    %132 = arith.subf %128, %131 : vector<2x8x4xf32>
    %cst_29 = arith.constant 0.000000e+00 : f32
    %133 = vector.broadcast %cst_29 : f32 to vector<2x8x4xf32>
    %134 = arith.maximumf %132, %133 : vector<2x8x4xf32>
    %135 = vector.broadcast %107 : vector<2x8x1xf32> to vector<2x8x4xf32>
    %136 = vector.broadcast %119 : vector<2x1x4xf32> to vector<2x8x4xf32>
    %137 = arith.minimumf %135, %136 : vector<2x8x4xf32>
    %138 = vector.broadcast %104 : vector<2x8x1xf32> to vector<2x8x4xf32>
    %139 = vector.broadcast %116 : vector<2x1x4xf32> to vector<2x8x4xf32>
    %140 = arith.maximumf %138, %139 : vector<2x8x4xf32>
    %141 = arith.subf %137, %140 : vector<2x8x4xf32>
    %cst_30 = arith.constant 0.000000e+00 : f32
    %142 = vector.broadcast %cst_30 : f32 to vector<2x8x4xf32>
    %143 = arith.maximumf %141, %142 : vector<2x8x4xf32>
    %144 = arith.mulf %134, %143 : vector<2x8x4xf32>
    %145 = vector.broadcast %122 : vector<2x8x1xf32> to vector<2x8x4xf32>
    %146 = vector.broadcast %125 : vector<2x1x4xf32> to vector<2x8x4xf32>
    %147 = arith.addf %145, %146 : vector<2x8x4xf32>
    %148 = arith.subf %147, %144 : vector<2x8x4xf32>
    %cst_31 = arith.constant 1.000000e-07 : f32
    %149 = vector.broadcast %cst_31 : f32 to vector<2x8x4xf32>
    %150 = arith.addf %148, %149 : vector<2x8x4xf32>
    %151 = arith.divf %144, %150 : vector<2x8x4xf32>
    %152 = vector.broadcast %101 : vector<2x8x1xf32> to vector<2x8x4xf32>
    %153 = vector.broadcast %113 : vector<2x1x4xf32> to vector<2x8x4xf32>
    %154 = arith.maximumf %152, %153 : vector<2x8x4xf32>
    %155 = vector.broadcast %98 : vector<2x8x1xf32> to vector<2x8x4xf32>
    %156 = vector.broadcast %110 : vector<2x1x4xf32> to vector<2x8x4xf32>
    %157 = arith.minimumf %155, %156 : vector<2x8x4xf32>
    %158 = arith.subf %154, %157 : vector<2x8x4xf32>
    %159 = vector.broadcast %107 : vector<2x8x1xf32> to vector<2x8x4xf32>
    %160 = vector.broadcast %119 : vector<2x1x4xf32> to vector<2x8x4xf32>
    %161 = arith.maximumf %159, %160 : vector<2x8x4xf32>
    %162 = vector.broadcast %104 : vector<2x8x1xf32> to vector<2x8x4xf32>
    %163 = vector.broadcast %116 : vector<2x1x4xf32> to vector<2x8x4xf32>
    %164 = arith.minimumf %162, %163 : vector<2x8x4xf32>
    %165 = arith.subf %161, %164 : vector<2x8x4xf32>
    %166 = arith.mulf %158, %165 : vector<2x8x4xf32>
    %167 = arith.subf %166, %148 : vector<2x8x4xf32>
    %cst_32 = arith.constant 1.000000e-07 : f32
    %168 = vector.broadcast %cst_32 : f32 to vector<2x8x4xf32>
    %169 = arith.addf %166, %168 : vector<2x8x4xf32>
    %170 = arith.divf %167, %169 : vector<2x8x4xf32>
    %171 = arith.subf %151, %170 : vector<2x8x4xf32>
    %c16_i32 = arith.constant 16 : i32
    %172 = vector.broadcast %c16_i32 : i32 to vector<2x1x4xi32>
    %173 = arith.cmpi slt, %28, %172 : vector<2x1x4xi32>
    %174 = arith.extui %173 : vector<2x1x4xi1> to vector<2x1x4xi32>
    %175 = arith.sitofp %174 : vector<2x1x4xi32> to vector<2x1x4xf32>
    %cst_33 = arith.constant 5.000000e+00 : f32
    %176 = vector.broadcast %cst_33 : f32 to vector<2x8x4xf32>
    %177 = arith.mulf %176, %95 : vector<2x8x4xf32>
    %cst_34 = arith.constant 2.000000e+00 : f32
    %178 = vector.broadcast %cst_34 : f32 to vector<2x8x4xf32>
    %179 = arith.mulf %178, %66 : vector<2x8x4xf32>
    %180 = arith.addf %177, %179 : vector<2x8x4xf32>
    %cst_35 = arith.constant 0.000000e+00 : f32
    %181 = vector.broadcast %cst_35 : f32 to vector<2x8x4xf32>
    %182 = arith.subf %181, %171 : vector<2x8x4xf32>
    %cst_36 = arith.constant 2.000000e+00 : f32
    %183 = vector.broadcast %cst_36 : f32 to vector<2x8x4xf32>
    %184 = arith.mulf %183, %182 : vector<2x8x4xf32>
    %185 = arith.addf %180, %184 : vector<2x8x4xf32>
    %cst_37 = arith.constant 1.000000e+00 : f32
    %186 = vector.broadcast %cst_37 : f32 to vector<2x1x4xf32>
    %187 = arith.subf %186, %175 : vector<2x1x4xf32>
    %cst_38 = arith.constant 1.000000e+06 : f32
    %188 = vector.broadcast %cst_38 : f32 to vector<2x1x4xf32>
    %189 = arith.mulf %187, %188 : vector<2x1x4xf32>
    %190 = vector.broadcast %189 : vector<2x1x4xf32> to vector<2x8x4xf32>
    %191 = arith.addf %185, %190 : vector<2x8x4xf32>
    %c0_39 = arith.constant 0 : index
    %c0_40 = arith.constant 0 : index
    %c0_41 = arith.constant 0 : index
    %192 = vector.load %arg4[%c0_39, %c0_40, %c0_41] : memref<2x8x4xf32, #tpu.memory_space<vmem>>, vector<2x8x4xf32>
    tpu.vector_store %arg4[%c0_39, %c0_40, %c0_41], %191 {strides = array<i32>} : memref<2x8x4xf32, #tpu.memory_space<vmem>>, vector<2x8x4xf32>,
    return
  }
}

</mosaic_0001>

<bundles_post_ra>
// kernel: tpu_custom_call.1
= control target key start
LH: loop header
LB: loop body
LE: loop exit
PB: predicated region body
PF: predicated region fallthrough
CT: control target
= control target key end

     0   :  { %9 = vsyncpa [#allocation3], 0  ;;  %s628_s18 = smov [#allocation2]   ;;  %s629_s20 = smov 16   ;;  %s883_s0 = inlined_call_operand.vmem [shape: f32[2,8,16], index: 0, kind: input, shape index: {}]   ;;  %s884_s1 = inlined_call_operand.vmem [shape: f32[2,8,4], index: 1, kind: input, shape index: {}]   ;;  %s885_s2 = inlined_call_operand.hbm [shape: s32[2,1,4], index: 2, kind: input, shape index: {}]   ;;  %s886_s3 = inlined_call_operand.vmem [shape: f32[2,4,4], index: 3, kind: input, shape index: {}]   ;;  %s887_s4 = inlined_call_operand.vmem [shape: f32[2,8,4], index: 4, kind: output, shape index: {}]  }
   0x1   :  { %s18_s17 = sshll.u32 %s885_s2, 4  ;;  %s20_s19 = sshll.u32 %s628_s18, 4  ;;  %s19_s17 = int_to_ptr.hbm [resolvable:$true] %s18_s17  ;;  %s21_s19 = int_to_ptr.vmem [resolvable:$true] %s20_s19 }
   0x2   :  { %s630_s21 = smov 1  }
   0x3   :  { %26 = dma.hbm_to_vmem [thread:$0]  %s19_s17, 32, %s21_s19, [#allocation3], %s629_s20, %s629_s20, %s630_s21  }
   0x4   :  { %626 = dma.done.wait [#allocation3], 32  }
   0x5   :  { %627 = vsyncadd [#allocation3], 4294967264  ;;  %v631_v0 = vmov 0   ;;  %v632_v1 = vmov 1   ;;  %v633_v2 = vmov 2   ;;  %v634_v5 = vmov 3  }
   0x6   :  { %559 = vset.pattern.permute.xlu0 %v631_v0  ;;  %560 = vset.pattern.permute.xlu2 %v632_v1  ;;  %v669_v3 = vld [vmem:[#allocation2] sm:$0x1]  ;;  %v673_v4 = vld [vmem:[#allocation2 + $0x1] sm:$0x1]  ;;  %s635_s23 = smov 126   ;;  %v695_v8 = vld [vmem:[%s884_s1 + $0x8] sm:$0xff]  ;;  %v123_v52 = vlaneseq }
   0x7   :  { %562 = vset.pattern.permute.xlu1 %v633_v2  ;;  %126 = vperm.xlu0 %559, %v669_v3   ;;  %v687_v6 = vld [vmem:[%s884_s1] sm:$0xff]  ;;  %v292_v9 = vmul.f32 0.5, %v695_v8  ;;  %v705_v14 = vld [vmem:[%s883_s0 + $0x8] sm:$0xff]  ;;  %vm141_vm6 = vcmask 130048  }
   0x8   :  { %149 = vperm.xlu2 %560, %v669_v3   ;;  %175 = vperm.xlu1 %562, %v673_v4   ;;  %v291_v7 = vmul.f32 0.5, %v687_v6  ;;  %v33_v10 = vld [vmem:[%s883_s0] sm:$0xff]  ;;  %v538_v18 = vmul.f32 -1.442695, %v705_v14  ;;  %v76_v25 = vand.u32 2147483647, %v705_v14 }
   0x9   :  { %v537_v11 = vmul.f32 -1.442695, %v33_v10  ;;  %v75_v12 = vand.u32 2147483647, %v33_v10  ;;  %v73_v40 = vmax.f32 %v33_v10, 0.0  ;;  %v713_v57 = vand.u32 127, %v123_v52 }
   0xa   :  { %v78_v34 = vsub.f32 0.0, %v76_v25  ;;  %s637_s0 = smov 127  }
   0xb   :  { %578 = vpow2.f32 %v537_v11  ;;  %v77_v13 = vsub.f32 0.0, %v75_v12 }
   0xc   :  { %v81_v43 = vmul.f32 1.442695, %v78_v34 }
   0xd   :  { %v79_v17 = vmul.f32 1.442695, %v77_v13 }
   0xf   :  { %130 = vperm.xlu0 %559, %v673_v4  }
  0x10   :  { %153 = vperm.xlu2 %560, %v673_v4   ;;  %564 = vset.pattern.permute.xlu1 %v634_v5 }
  0x11   :  { %197 = vperm.xlu1 %564, %v673_v4   ;;  %v579_v15 = vpop.eup %578 }
  0x12   :  { %v41_v16 = vadd.f32 1.0, %v579_v15 }
  0x14   :  { %580 = vrcp.f32 %v41_v16  ;;  %v54_v27 = vand.u32 2147483648, %v41_v16  ;;  %vm48_vm0 = vweird.f32 %v41_v16  ;;  %v52_v31 = vand.u32 2147483647, %v41_v16 }
  0x15   :  { %582 = vpow2.f32 %v79_v17 }
  0x16   :  { %584 = vpow2.f32 %v538_v18  ;;  %v55_v32 = vor.u32 1.1754944e-38, %v54_v27  ;;  %vm53_vm3 = vcmp.eq.f32.partialorder %v52_v31, 8.507059e+37  ;;  %v74_v27 = vmax.f32 %v705_v14, 0.0 }
  0x17   :  { %563 = vset.pattern.permute.xlu0 %v634_v5 }
  0x18   :  { %561 = vset.pattern.permute.xlu2 %v633_v2  ;;  %193 = vperm.xlu0 %563, %v669_v3  }
  0x19   :  { %171 = vperm.xlu2 %561, %v669_v3   ;;  %565 = vset.pattern.permute.xlu1 %v631_v0 }
  0x1a   :  { %v581_v19 = vpop.eup %580 }
  0x1b   :  { %v583_v20 = vpop.eup %582  ;;  %v44_v21 = vmul.f32 %v581_v19, %v41_v16  ;;  %vm49_vm1 = vweird.f32 %v581_v19 }
  0x1c   :  { %v83_v22 = vadd.f32 1.0, %v583_v20  ;;  %v585_v23 = vpop.eup %584  ;;  %v86_v28 = vmul.f32 -0.5, %v583_v20  ;;  %vm50_vm2 = vmor %vm48_vm0, %vm49_vm1  ;;  %v89_v36 = vand.u32 2147483647, %v583_v20 }
  0x1d   :  { %v45_v24 = vsub.f32 1.0, %v44_v21  ;;  %v709_v29 = vadd.f32 1.0, %v585_v23 }
  0x1e   :  { %586 = vlog2.f32 %v83_v22  ;;  %v87_v33 = vadd.f32 1.0, %v86_v28  ;;  %vm90_vm4 = vcmp.lt.f32.partialorder %v89_v36, 0.0004427343 }
  0x1f   :  { %v46_v26 = vmul.f32 %v581_v19, %v45_v24  ;;  %588 = vrcp.f32 %v709_v29  ;;  %vm63_vm7 = vweird.f32 %v709_v29  ;;  %v69_v11 = vand.u32 2147483648, %v709_v29 }
  0x20   :  { %567 = vset.pattern.permute.xlu0 %v632_v1  ;;  %v88_v39 = vmul.f32 %v583_v20, %v87_v33  ;;  %590 = vpow2.f32 %v81_v43  ;;  %v67_v16 = vand.u32 2147483647, %v709_v29 }
  0x21   :  { %295 = vrot.lane.b32.xlu2 %v291_v7, %s635_s23  ;;  %v47_v30 = vadd.f32 %v581_v19, %v46_v26  ;;  %v636_v7 = vmov 0.0   ;;  %v70_v18 = vor.u32 1.1754944e-38, %v69_v11 }
  0x22   :  { %566 = vset.pattern.permute.xlu2 %v631_v0  ;;  %vm68_vm10 = vcmp.eq.f32.partialorder %v67_v16, 8.507059e+37 }
  0x23   :  { %v51_v35 = vsel %vm50_vm2, %v581_v19, %v47_v30 }
  0x24   :  { %v587_v37 = vpop.eup %586  ;;  %v56_v38 = vsel %vm53_vm3, %v55_v32, %v51_v35  ;;  %vm214_vm3 = vcmask 7168  }
  0x25   :  { %v85_v41 = vmul.f32 0.6931472, %v587_v37  ;;  %v111_v42 = vsub.f32 1.0, %v56_v38  ;;  %v105_v45 = vmul.f32 0.75, %v56_v38  ;;  %v589_v48 = vpop.eup %588 }
  0x26   :  { %v59_v53 = vmul.f32 %v589_v48, %v709_v29  ;;  %v591_v56 = vpop.eup %590  ;;  %vm64_vm8 = vweird.f32 %v589_v48 }
  0x27   :  { %v91_v44 = vsel %vm90_vm4, %v88_v39, %v85_v41  ;;  %v113_v46 = vmul.f32 0.25, %v111_v42  ;;  %v107_v50 = vmul.f32 %v105_v45, %v56_v38  ;;  %v92_v62 = vadd.f32 1.0, %v591_v56  ;;  %vm65_vm9 = vmor %vm63_vm7, %vm64_vm8 }
  0x28   :  { %v101_v47 = vadd.f32 %v91_v44, %v73_v40  ;;  %v60_v58 = vsub.f32 1.0, %v59_v53  ;;  %v95_v12 = vmul.f32 -0.5, %v591_v56  ;;  %v98_v22 = vand.u32 2147483647, %v591_v56 }
  0x29   :  { %297 = vrot.lane.b32.xlu2 %v292_v9, %s635_s23  ;;  %v115_v51 = vmul.f32 %v113_v46, %v111_v42  ;;  %592 = vlog2.f32 %v92_v62  ;;  %vm217_vm4 = vcmask 15360  }
  0x2a   :  { %v103_v49 = vsub.f32 %v101_v47, %v33_v10  ;;  %v109_v54 = vmul.f32 %v107_v50, %v101_v47  ;;  %v61_v63 = vmul.f32 %v589_v48, %v60_v58  ;;  %v96_v19 = vadd.f32 1.0, %v95_v12 }
  0x2b   :  { %vm99_vm11 = vcmp.lt.f32.partialorder %v98_v22, 0.0004427343 }
  0x2c   :  { %v117_v55 = vmul.f32 %v115_v51, %v103_v49  ;;  %v62_v15 = vadd.f32 %v589_v48, %v61_v63  ;;  %v97_v25 = vmul.f32 %v591_v56, %v96_v19 }
  0x2e   :  { %v715_v61 = vsub.f32 %v117_v55, %v109_v54  ;;  %v66_v21 = vsel %vm65_vm9, %v589_v48, %v62_v15 }
  0x2f   :  { %v593_v20 = vpop.eup %592  ;;  %v71_v23 = vsel %vm68_vm10, %v70_v18, %v66_v21 }
  0x30   :  { %v94_v24 = vmul.f32 0.6931472, %v593_v20  ;;  %v112_v28 = vsub.f32 1.0, %v71_v23  ;;  %v106_v33 = vmul.f32 0.75, %v71_v23 }
  0x32   :  { %v100_v31 = vsel %vm99_vm11, %v97_v25, %v94_v24  ;;  %v114_v34 = vmul.f32 0.25, %v112_v28  ;;  %v108_v40 = vmul.f32 %v106_v33, %v71_v23 }
  0x33   :  { %v102_v32 = vadd.f32 %v100_v31, %v74_v27 }
  0x34   :  { %v116_v41 = vmul.f32 %v114_v34, %v112_v28 }
  0x35   :  { %v104_v39 = vsub.f32 %v102_v32, %v705_v14  ;;  %v110_v45 = vmul.f32 %v108_v40, %v102_v32 }
  0x37   :  { %v118_v46 = vmul.f32 %v116_v41, %v104_v39  ;;  %v779_v39 = vld [vmem:[%s886_s3 + $0x4] sm:$0xf] }
  0x38   :  { %v238_v41 = vperm.slane %v779_v39, 0 }
  0x39   :  { %v120_v51 = vsub.f32 %v118_v46, %v110_v45 }
  0x62   :  { %v150_v59 = vpop.permute.xlu2 %149 }
  0x63   :  { %v151_v60 = vperm.slane %v150_v59, 0 }
  0x65   :  { %vm156_vm5 = vcmp.eq.s32.totalorder %v151_v60, %v713_v57 }
  0x66   :  { %v541_v9 = vsel %vm156_vm5, 1.0, %v636_v7  ;;  %vm220_vm5 = vcmask 23552  }
  0x67   :  { %v162_v10 = vmul.f32 %v541_v9, %v715_v61 }
  0x69   :  { %v164_v13 = vsel %vm141_vm6, %v162_v10, 0.0 }
  0x6a   :  { %v154_v17 = vpop.permute.xlu2 %153  ;;  %165 = vadd.xlane.f32.xlu0 %v164_v13 }
  0x6b   :  { %v155_v49 = vperm.slane %v154_v17, 0 }
  0x6d   :  { %vm157_vm15 = vcmp.eq.s32.totalorder %v155_v49, %v713_v57 }
  0x6e   :  { %v542_v60 = vsel %vm157_vm15, 1.0, %v636_v7  ;;  %vm529_vm15 = vcmask 31744  }
  0x6f   :  { %v163_v10 = vmul.f32 %v542_v60, %v120_v51  ;;  %v268_v60 = vperm.slane %v779_v39, 2 }
  0x71   :  { %v167_v15 = vsel %vm141_vm6, %v163_v10, 0.0 }
  0x73   :  { %v172_v26 = vpop.permute.xlu2 %171 }
  0x74   :  { %v173_v30 = vperm.slane %v172_v26, 0 }
  0x76   :  { %vm178_vm12 = vcmp.eq.s32.totalorder %v173_v30, %v713_v57 }
  0x77   :  { %v543_v29 = vsel %vm178_vm12, 1.0, %v636_v7 }
  0x78   :  { %v184_v35 = vmul.f32 %v543_v29, %v715_v61 }
  0x79   :  { %v127_v36 = vpop.permute.xlu0 %126 }
  0x7a   :  { %v186_v37 = vsel %vm141_vm6, %v184_v35, 0.0  ;;  %v128_v38 = vperm.slane %v127_v36, 0  ;;  %v176_v42 = vpop.permute.xlu1 %175 }
  0x7b   :  { %187 = vadd.xlane.f32.xlu2 %v186_v37  ;;  %v177_v58 = vperm.slane %v176_v42, 0  ;;  %v296_v19 = vpop.permute.xlu2 %295 }
  0x7c   :  { %vm133_vm13 = vcmp.eq.s32.totalorder %v128_v38, %v713_v57  ;;  %v303_v21 = vadd.f32 %v296_v19, %v687_v6 }
  0x7d   :  { %v539_v43 = vsel %vm133_vm13, 1.0, %v636_v7  ;;  %vm179_vm1 = vcmp.eq.s32.totalorder %v177_v58, %v713_v57 }
  0x7e   :  { %v139_v44 = vmul.f32 %v539_v43, %v715_v61  ;;  %v544_v13 = vsel %vm179_vm1, 1.0, %v636_v7 }
  0x7f   :  { %v185_v17 = vmul.f32 %v544_v13, %v120_v51 }
  0x80   :  { %v142_v47 = vsel %vm141_vm6, %v139_v44, 0.0  ;;  %v252_v44 = vperm.slane %v779_v39, 1 }
  0x81   :  { %v131_v48 = vpop.permute.xlu0 %130  ;;  %143 = vadd.xlane.f32.xlu1 %v142_v47  ;;  %v189_v18 = vsel %vm141_vm6, %v185_v17, 0.0 }
  0x82   :  { %v132_v50 = vperm.slane %v131_v48, 0 }
  0x83   :  { %v198_v52 = vpop.permute.xlu1 %197 }
  0x84   :  { %vm134_vm14 = vcmp.eq.s32.totalorder %v132_v50, %v713_v57  ;;  %v199_v14 = vperm.slane %v198_v52, 0 }
  0x85   :  { %v540_v53 = vsel %vm134_vm14, 1.0, %v636_v7 }
  0x86   :  { %v140_v54 = vmul.f32 %v540_v53, %v120_v51  ;;  %vm201_vm0 = vcmp.eq.s32.totalorder %v199_v14, %v713_v57 }
  0x87   :  { %v546_v55 = vsel %vm201_vm0, 1.0, %v636_v7  ;;  %vm500_vm0 = vcmp.lt.s32.totalorder %v673_v4, 16 }
  0x88   :  { %v145_v56 = vsel %vm141_vm6, %v140_v54, 0.0  ;;  %v207_v59 = vmul.f32 %v546_v55, %v120_v51 }
  0x89   :  { %146 = vadd.xlane.f32.xlu1 %v145_v56 }
  0x8a   :  { %v194_v62 = vpop.permute.xlu0 %193  ;;  %v211_v63 = vsel %vm141_vm6, %v207_v59, 0.0 }
  0x8b   :  { %v195_v9 = vperm.slane %v194_v62, 0  ;;  %212 = vadd.xlane.f32.xlu0 %v211_v63 }
  0x8d   :  { %vm200_vm2 = vcmp.eq.s32.totalorder %v195_v9, %v713_v57  ;;  %v301_v57 = vsub.f32 %v687_v6, %v296_v19  ;;  %v284_v19 = vperm.slane %v779_v39, 3 }
  0x8e   :  { %v545_v11 = vsel %vm200_vm2, 1.0, %v636_v7 }
  0x8f   :  { %v206_v12 = vmul.f32 %v545_v11, %v715_v61  ;;  %v298_v61 = vpop.permute.xlu2 %297  ;;  %v317_v23 = vsub.f32 %v303_v21, %v301_v57 }
  0x90   :  { %v304_v20 = vadd.f32 %v298_v61, %v695_v8  ;;  %v302_v22 = vsub.f32 %v695_v8, %v298_v61 }
  0x91   :  { %168 = vadd.xlane.f32.xlu1 %v167_v15  ;;  %v208_v16 = vsel %vm141_vm6, %v206_v12, 0.0  ;;  %vm499_vm6 = vcmp.lt.s32.totalorder %v669_v3, 16 }
  0x92   :  { %209 = vadd.xlane.f32.xlu2 %v208_v16  ;;  %v318_v24 = vsub.f32 %v304_v20, %v302_v22 }
  0x99   :  { %190 = vadd.xlane.f32.xlu1 %v189_v18 }
  0x9f   :  { %244 = vperm.xlu0 %567, %v687_v6  }
  0xa7   :  { %384 = vperm.xlu0 %567, %v301_v57  }
  0xaa   :  { %234 = vperm.xlu2 %566, %v695_v8  }
  0xaf   :  { %574 = vset.pattern.permute.xlu0 %v631_v0 }
  0xb2   :  { %346 = vperm.xlu2 %566, %v304_v20   ;;  %229 = vperm.xlu1 %565, %v687_v6  }
  0xba   :  { %360 = vperm.xlu2 %566, %v302_v22   ;;  %321 = vrot.lane.b32.xlu1 %v317_v23, %s637_s0 }
  0xbb   :  { %568 = vset.pattern.permute.xlu1 %v632_v1 }
  0xc2   :  { %572 = vset.pattern.permute.xlu2 %v632_v1  ;;  %323 = vrot.lane.b32.xlu1 %v318_v24, %s637_s0 }
  0xc3   :  { %376 = vperm.xlu2 %572, %v304_v20  }
  0xca   :  { %248 = vperm.xlu1 %568, %v695_v8  }
  0xcb   :  { %573 = vset.pattern.permute.xlu2 %v631_v0 }
  0xd2   :  { %569 = vset.pattern.permute.xlu1 %v633_v2 }
  0xd3   :  { %260 = vperm.xlu1 %569, %v687_v6  }
  0xdb   :  { %570 = vset.pattern.permute.xlu1 %v631_v0 }
  0xdc   :  { %341 = vperm.xlu1 %570, %v303_v21  }
  0xdd   :  { %v166_v25 = vpop.xlane.xlu0 %165 }
  0xe4   :  { %355 = vperm.xlu1 %570, %v301_v57  }
  0xec   :  { %571 = vset.pattern.permute.xlu1 %v632_v1 }
  0xed   :  { %372 = vperm.xlu1 %571, %v303_v21  }
  0xee   :  { %v188_v26 = vpop.xlane.xlu2 %187 }
  0xf4   :  { %v144_v27 = vpop.xlane.xlu1 %143 }
  0xf5   :  { %v215_v28 = vsel %vm214_vm3, %v144_v27, %v166_v25  ;;  %388 = vperm.xlu1 %571, %v302_v22  }
  0xf6   :  { %v218_v30 = vsel %vm217_vm4, %v215_v28, %v188_v26 }
  0xfc   :  { %v147_v31 = vpop.xlane.xlu1 %146 }
  0xfd   :  { %575 = vset.pattern.permute.xlu1 %v633_v2 }
  0xfe   :  { %264 = vperm.xlu1 %575, %v695_v8   ;;  %v213_v33 = vpop.xlane.xlu0 %212 }
 0x104   :  { %v169_v0 = vpop.xlane.xlu1 %168 }
 0x105   :  { %v216_v29 = vsel %vm214_vm3, %v147_v31, %v169_v0  ;;  %v210_v32 = vpop.xlane.xlu2 %209 }
 0x106   :  { %v769_v1 = vsel %vm220_vm5, %v218_v30, %v210_v32  ;;  %577 = vset.pattern.permute.xlu1 %v634_v5 }
 0x107   :  { %280 = vperm.xlu1 %577, %v695_v8  }
 0x10c   :  { %v191_v34 = vpop.xlane.xlu1 %190 }
 0x10d   :  { %v219_v35 = vsel %vm217_vm4, %v216_v29, %v191_v34  ;;  %v235_v8 = vpop.permute.xlu2 %234 }
 0x10e   :  { %v222_v36 = vsel %vm220_vm5, %v219_v35, %v213_v33  ;;  %v240_v43 = vsub.f32 %v235_v8, %v238_v41  ;;  %v306_v8 = vmul.f32 0.5, %v779_v39 }
 0x10f   :  { %v508_v0 = vmul.f32 2.0, %v222_v36 }
 0x110   :  { %v242_v46 = vand.u32 2147483647, %v240_v43 }
 0x111   :  { %v245_v54 = vpop.permute.xlu0 %244 }
 0x115   :  { %v795_v56 = vpop.permute.xlu2 %346 }
 0x119   :  { %v385_v12 = vpop.permute.xlu0 %384 }
 0x11d   :  { %v801_v57 = vpop.permute.xlu2 %360 }
 0x124   :  { %v774_v37 = vpop.permute.xlu1 %229 }
 0x125   :  { %v808_v35 = vpop.permute.xlu2 %376 }
 0x12c   :  { %v322_v2 = vpop.permute.xlu1 %321 }
 0x12d   :  { %v327_v38 = vmul.f32 %v322_v2, %v317_v23 }
 0x12f   :  { %403 = vperm.xlu2 %573, %v327_v38  }
 0x134   :  { %v324_v40 = vpop.permute.xlu1 %323 }
 0x135   :  { %v328_v42 = vmul.f32 %v324_v40, %v318_v24 }
 0x137   :  { %576 = vset.pattern.permute.xlu2 %v634_v5  ;;  %408 = vperm.xlu0 %574, %v328_v42   ;;  %v790_v5 = vld [vmem:[%s886_s3] sm:$0xf] }
 0x138   :  { %276 = vperm.xlu2 %576, %v687_v6   ;;  %v305_v6 = vmul.f32 0.5, %v790_v5 }
 0x13a   :  { %v309_v55 = vrot.slane %v305_v6, 2 }
 0x13c   :  { %v249_v45 = vpop.permute.xlu1 %248  ;;  %v313_v58 = vsub.f32 %v790_v5, %v309_v55  ;;  %v315_v59 = vadd.f32 %v309_v55, %v790_v5 }
 0x13d   :  { %v254_v47 = vsub.f32 %v249_v45, %v252_v44  ;;  %v251_v44 = vperm.slane %v790_v5, 1  ;;  %v237_v45 = vperm.slane %v790_v5, 0 }
 0x13e   :  { %v379_v62 = vperm.slane %v315_v59, 1  ;;  %v391_v9 = vperm.slane %v313_v58, 1  ;;  %v363_v10 = vperm.slane %v313_v58, 0  ;;  %v349_v13 = vperm.slane %v315_v59, 0 }
 0x13f   :  { %v256_v48 = vand.u32 2147483647, %v254_v47  ;;  %v329_v25 = vsub.f32 %v315_v59, %v313_v58  ;;  %v267_v47 = vperm.slane %v790_v5, 2  ;;  %v253_v6 = vsub.f32 %v245_v54, %v251_v44 }
 0x140   :  { %v457_v16 = vmin.f32 %v385_v12, %v391_v9  ;;  %v393_v29 = vmax.f32 %v385_v12, %v391_v9  ;;  %v239_v55 = vsub.f32 %v774_v37, %v237_v45  ;;  %v283_v54 = vperm.slane %v790_v5, 3 }
 0x141   :  { %v258_v49 = vadd.f32 %v256_v48, %v242_v46  ;;  %v333_v31 = vrot.slane %v329_v25, 1  ;;  %v547_v45 = vsel %vm499_vm6, 1.0, %v636_v7 }
 0x142   :  { %v517_v3 = vsub.f32 1.0, %v547_v45 }
 0x143   :  { %v337_v41 = vmul.f32 %v333_v31, %v329_v25 }
 0x145   :  { %v785_v50 = vpop.permute.xlu1 %260  ;;  %v411_v36 = vperm.slane %v337_v41, 0 }
 0x14e   :  { %v342_v51 = vpop.permute.xlu1 %341 }
 0x14f   :  { %v449_v61 = vmax.f32 %v342_v51, %v349_v13  ;;  %v351_v2 = vmin.f32 %v342_v51, %v349_v13  ;;  %v310_v51 = vrot.slane %v306_v8, 2 }
 0x151   :  { %v314_v58 = vsub.f32 %v779_v39, %v310_v51 }
 0x153   :  { %v364_v37 = vperm.slane %v314_v58, 0  ;;  %v392_v12 = vperm.slane %v314_v58, 1 }
 0x156   :  { %v356_v52 = vpop.permute.xlu1 %355 }
 0x157   :  { %v451_v17 = vmin.f32 %v356_v52, %v363_v10  ;;  %v365_v32 = vmax.f32 %v356_v52, %v363_v10  ;;  %v255_v10 = vand.u32 2147483647, %v253_v6 }
 0x159   :  { %v453_v22 = vsub.f32 %v449_v61, %v451_v17  ;;  %v367_v42 = vsub.f32 %v351_v2, %v365_v32 }
 0x15b   :  { %v369_v46 = vmax.f32 %v367_v42, 0.0 }
 0x15f   :  { %v373_v14 = vpop.permute.xlu1 %372 }
 0x160   :  { %v455_v15 = vmax.f32 %v373_v14, %v379_v62  ;;  %v381_v28 = vmin.f32 %v373_v14, %v379_v62 }
 0x162   :  { %v459_v20 = vsub.f32 %v455_v15, %v457_v16  ;;  %v395_v38 = vsub.f32 %v381_v28, %v393_v29  ;;  %v507_v28 = vmul.f32 2.0, %v769_v1 }
 0x164   :  { %v803_v26 = vmul.f32 %v459_v20, %v453_v22  ;;  %v397_v43 = vmax.f32 %v395_v38, 0.0 }
 0x166   :  { %v806_v33 = vadd.f32 1e-07, %v803_v26  ;;  %v819_v52 = vmul.f32 %v397_v43, %v369_v46  ;;  %v366_v43 = vmax.f32 %v801_v57, %v364_v37 }
 0x167   :  { %v793_v53 = vpop.permute.xlu1 %388 }
 0x168   :  { %594 = vrcp.f32 %v806_v33  ;;  %v458_v61 = vmin.f32 %v793_v53, %v392_v12  ;;  %vm472_vm7 = vweird.f32 %v806_v33  ;;  %v476_v2 = vand.u32 2147483647, %v806_v33 }
 0x169   :  { %v478_v38 = vand.u32 2147483648, %v806_v33 }
 0x16a   :  { %vm477_vm14 = vcmp.eq.f32.partialorder %v476_v2, 8.507059e+37 }
 0x170   :  { %v265_v63 = vpop.permute.xlu1 %264 }
 0x171   :  { %v270_v11 = vsub.f32 %v265_v63, %v268_v60  ;;  %v269_v60 = vsub.f32 %v785_v50, %v267_v47  ;;  %v830_v63 = vadd.f32 %v310_v51, %v779_v39  ;;  %v452_v39 = vmin.f32 %v801_v57, %v364_v37 }
 0x172   :  { %v479_v51 = vor.u32 1.1754944e-38, %v478_v38 }
 0x173   :  { %v272_v18 = vand.u32 2147483647, %v270_v11  ;;  %v241_v11 = vand.u32 2147483647, %v239_v55  ;;  %v271_v13 = vand.u32 2147483647, %v269_v60  ;;  %v330_v41 = vsub.f32 %v830_v63, %v314_v58 }
 0x174   :  { %v350_v16 = vperm.slane %v830_v63, 0  ;;  %v380_v50 = vperm.slane %v830_v63, 1 }
 0x175   :  { %v274_v23 = vadd.f32 %v272_v18, %v258_v49  ;;  %v817_v49 = vpop.eup %594  ;;  %v257_v18 = vadd.f32 %v255_v10, %v241_v11  ;;  %v519_v10 = vmul.f32 1000000.0, %v517_v3 }
 0x176   :  { %v468_v62 = vmul.f32 %v817_v49, %v806_v33  ;;  %vm473_vm8 = vweird.f32 %v817_v49  ;;  %v382_v55 = vmin.f32 %v808_v35, %v380_v50 }
 0x177   :  { %v273_v20 = vadd.f32 %v271_v13, %v257_v18  ;;  %vm854_vm10 = vmor %vm472_vm7, %vm473_vm8  ;;  %v523_v13 = vperm.slane %v519_v10, 0 }
 0x178   :  { %v469_v15 = vsub.f32 1.0, %v468_v62 }
 0x179   :  { %v281_v21 = vpop.permute.xlu1 %280 }
 0x17a   :  { %v286_v24 = vsub.f32 %v281_v21, %v284_v19  ;;  %v470_v21 = vmul.f32 %v817_v49, %v469_v15 }
 0x17c   :  { %v288_v27 = vand.u32 2147483647, %v286_v24  ;;  %v456_v24 = vmax.f32 %v808_v35, %v380_v50  ;;  %v471_v29 = vadd.f32 %v817_v49, %v470_v21 }
 0x17e   :  { %v290_v30 = vadd.f32 %v288_v27, %v274_v23  ;;  %v450_v23 = vmax.f32 %v795_v56, %v350_v16  ;;  %v460_v31 = vsub.f32 %v456_v24, %v458_v61  ;;  %v475_v57 = vsel %vm854_vm10, %v817_v49, %v471_v29 }
 0x17f   :  { %v352_v49 = vmin.f32 %v795_v56, %v350_v16 }
 0x180   :  { %v506_v34 = vmul.f32 5.0, %v290_v30  ;;  %v454_v30 = vsub.f32 %v450_v23, %v452_v39 }
 0x181   :  { %v368_v11 = vsub.f32 %v352_v49, %v366_v43 }
 0x182   :  { %v810_v40 = vadd.f32 %v508_v0, %v506_v34 }
 0x183   :  { %v370_v15 = vmax.f32 %v368_v11, 0.0 }
 0x189   :  { %v404_v48 = vpop.permute.xlu2 %403 }
 0x18a   :  { %v413_v14 = vadd.f32 %v411_v36, %v404_v48  ;;  %v850_v36 = vmul.f32 %v460_v31, %v454_v30  ;;  %v394_v48 = vmax.f32 %v793_v53, %v392_v12 }
 0x18c   :  { %v824_v59 = vsub.f32 %v413_v14, %v819_v52  ;;  %v334_v14 = vrot.slane %v330_v41, 1  ;;  %v466_v58 = vadd.f32 1e-07, %v850_v36  ;;  %v396_v53 = vsub.f32 %v382_v55, %v394_v48 }
 0x18e   :  { %v417_v9 = vadd.f32 1e-07, %v824_v59  ;;  %v463_v47 = vsub.f32 %v803_v26, %v824_v59  ;;  %v480_v26 = vsel %vm477_vm14, %v479_v51, %v475_v57  ;;  %v338_v63 = vmul.f32 %v334_v14, %v330_v41 }
 0x18f   :  { %v398_v37 = vmax.f32 %v396_v53, 0.0  ;;  %vm487_vm2 = vweird.f32 %v466_v58  ;;  %v491_v31 = vand.u32 2147483647, %v466_v58 }
 0x190   :  { %596 = vrcp.f32 %v417_v9  ;;  %v430_v34 = vand.u32 2147483648, %v417_v9  ;;  %v428_v1 = vand.u32 2147483647, %v417_v9  ;;  %vm424_vm11 = vweird.f32 %v417_v9 }
 0x191   :  { %v481_v62 = vmul.f32 %v480_v26, %v463_v47  ;;  %598 = vrcp.f32 %v466_v58  ;;  %v412_v12 = vperm.slane %v338_v63, 0  ;;  %vm492_vm8 = vcmp.eq.f32.partialorder %v491_v31, 8.507059e+37 }
 0x192   :  { %v277_v17 = vpop.permute.xlu2 %276  ;;  %v431_v33 = vor.u32 1.1754944e-38, %v430_v34  ;;  %vm429_vm13 = vcmp.eq.f32.partialorder %v428_v1, 8.507059e+37 }
 0x193   :  { %v285_v19 = vsub.f32 %v277_v17, %v283_v54 }
 0x195   :  { %v287_v5 = vand.u32 2147483647, %v285_v19 }
 0x196   :  { %v597_v22 = vpop.eup %596 }
 0x197   :  { %v420_v25 = vmul.f32 %v597_v22, %v417_v9  ;;  %v289_v27 = vadd.f32 %v287_v5, %v273_v20  ;;  %vm425_vm9 = vweird.f32 %v597_v22  ;;  %v599_v18 = vpop.eup %598 }
 0x198   :  { %vm426_vm12 = vmor %vm424_vm11, %vm425_vm9  ;;  %v483_v16 = vmul.f32 %v599_v18, %v466_v58  ;;  %vm488_vm1 = vweird.f32 %v599_v18 }
 0x199   :  { %v421_v0 = vsub.f32 1.0, %v420_v25  ;;  %v505_v32 = vmul.f32 5.0, %v289_v27  ;;  %v493_v27 = vand.u32 2147483648, %v466_v58  ;;  %vm489_vm4 = vmor %vm487_vm2, %vm488_vm1 }
 0x19a   :  { %v484_v20 = vsub.f32 1.0, %v483_v16 }
 0x19b   :  { %v422_v42 = vmul.f32 %v597_v22, %v421_v0  ;;  %v509_v8 = vadd.f32 %v507_v28, %v505_v32  ;;  %v548_v0 = vsel %vm500_vm0, 1.0, %v636_v7  ;;  %v494_v2 = vor.u32 1.1754944e-38, %v493_v27 }
 0x19c   :  { %v485_v21 = vmul.f32 %v599_v18, %v484_v20  ;;  %v518_v38 = vsub.f32 1.0, %v548_v0 }
 0x19d   :  { %v423_v46 = vadd.f32 %v597_v22, %v422_v42 }
 0x19e   :  { %v486_v24 = vadd.f32 %v599_v18, %v485_v21  ;;  %v520_v44 = vmul.f32 1000000.0, %v518_v38 }
 0x19f   :  { %v427_v6 = vsel %vm426_vm12, %v597_v22, %v423_v46 }
 0x1a0   :  { %v432_v60 = vsel %vm429_vm13, %v431_v33, %v427_v6  ;;  %v490_v34 = vsel %vm489_vm4, %v599_v18, %v486_v24  ;;  %v524_v46 = vperm.slane %v520_v44, 0 }
 0x1a1   :  { %v433_v59 = vmul.f32 %v432_v60, %v819_v52  ;;  %v400_v52 = vmul.f32 %v398_v37, %v370_v15  ;;  %v495_v1 = vsel %vm492_vm8, %v494_v2, %v490_v34 }
 0x1a3   :  { %v497_v9 = vsub.f32 %v433_v59, %v481_v62 }
 0x1a5   :  { %v511_v54 = vsub.f32 0.0, %v497_v9 }
 0x1a7   :  { %v513_v35 = vmul.f32 2.0, %v511_v54 }
 0x1a9   :  { %v515_v50 = vadd.f32 %v513_v35, %v509_v8  ;;  %v409_v17 = vpop.permute.xlu0 %408 }
 0x1aa   :  { %v414_v19 = vadd.f32 %v412_v12, %v409_v17 }
 0x1ab   :  { %v527_v39 = vadd.f32 %v523_v13, %v515_v50 }
 0x1ac   :  { %v416_v56 = vsub.f32 %v414_v19, %v400_v52 }
 0x1ad   :  { %530 = vst.msk [vmem:[%s887_s4] sm:$0xff] %vm529_vm15, %v527_v39 }
 0x1ae   :  { %v418_v61 = vadd.f32 1e-07, %v416_v56  ;;  %v464_v32 = vsub.f32 %v850_v36, %v416_v56 }
 0x1b0   :  { %600 = vrcp.f32 %v418_v61  ;;  %v445_v25 = vand.u32 2147483648, %v418_v61  ;;  %v443_v30 = vand.u32 2147483647, %v418_v61  ;;  %vm439_vm5 = vweird.f32 %v418_v61 }
 0x1b1   :  { %v496_v43 = vmul.f32 %v495_v1, %v464_v32 }
 0x1b2   :  { %v446_v4 = vor.u32 1.1754944e-38, %v445_v25  ;;  %vm444_vm7 = vcmp.eq.f32.partialorder %v443_v30, 8.507059e+37 }
 0x1b6   :  { %v601_v5 = vpop.eup %600 }
 0x1b7   :  { %v435_v22 = vmul.f32 %v601_v5, %v418_v61  ;;  %vm440_vm3 = vweird.f32 %v601_v5 }
 0x1b8   :  { %vm441_vm6 = vmor %vm439_vm5, %vm440_vm3 }
 0x1b9   :  { %v436_v23 = vsub.f32 1.0, %v435_v22 }
 0x1bb   :  { %v437_v28 = vmul.f32 %v601_v5, %v436_v23 }
 0x1bd   :  { %v438_v29 = vadd.f32 %v601_v5, %v437_v28 }
 0x1bf   :  { %v442_v41 = vsel %vm441_vm6, %v601_v5, %v438_v29 }
 0x1c0   :  { %v447_v42 = vsel %vm444_vm7, %v446_v4, %v442_v41 }
 0x1c1   :  { %v448_v8 = vmul.f32 %v447_v42, %v400_v52 }
 0x1c3   :  { %v498_v45 = vsub.f32 %v448_v8, %v496_v43 }
 0x1c5   :  { %v512_v7 = vsub.f32 0.0, %v498_v45 }
 0x1c7   :  { %v514_v47 = vmul.f32 2.0, %v512_v7 }
 0x1c9   :  { %v516_v57 = vadd.f32 %v514_v47, %v810_v40 }
 0x1cb   :  { %v528_v36 = vadd.f32 %v524_v46, %v516_v57 }
 0x1cd   :  { %531 = vst.msk [vmem:[%s887_s4 + $0x8] sm:$0xff] %vm529_vm15, %v528_v36 }
 0x1ce   :  { %536 = vsyncpa [#allocation3], 1 }

</bundles_post_ra>
